<compile_context>
chip_gen: v7x
topology: tpu7x:2x2x1
jax: 0.10.0
libtpu: 0.0.40
codegen_flags: <defaults>
</compile_context>

<pallas_src>
import functools

import jax
import jax.numpy as jnp
from jax.experimental import pallas as pl
from jax.experimental.pallas import tpu as pltpu

_LANE = 128
_SUBLANE = 8


def _round_up(x, m):
    return ((x + m - 1) // m) * m


def _logreg_kernel(x_ref, w_ref, b_ref, o_ref):
    # One (tm, tn) output tile: full-K matmul on the MXU (f32 accumulation),
    # then f32 bias add + sigmoid epilogue (exp + reciprocal on the EUP).
    z = jnp.dot(x_ref[...], w_ref[...], preferred_element_type=jnp.float32)
    z = z + b_ref[...].astype(jnp.float32)
    sig = pl.reciprocal(1.0 + jnp.exp(-z), approx=True)
    n = o_ref.shape[-1]
    if n != sig.shape[-1]:
        # Tiny-d_out case: single lane-padded column block, slice the valid
        # columns and accept one masked store (cheaper than a post-call copy).
        sig = sig[:, :n]
    o_ref[...] = sig.astype(o_ref.dtype)


def prepare_params(weight, bias, dtype=jnp.bfloat16):
    """One-time (init-time) parameter prep.

    weight: (D_out, D_in) in PyTorch nn.Linear layout; bias: (D_out,).
    Returns W^T as (D_in, D_out_pad) (only D_out padded to a lane multiple,
    K kept native) in `dtype`, and bias as (1, D_out_pad) in f32 (epilogue is
    always f32; v5e has no bf16 VPU/EUP).
    """
    d_out, d_in = weight.shape
    d_out_p = _round_up(d_out, _LANE)
    w_t = jnp.zeros((d_in, d_out_p), dtype)
    w_t = w_t.at[:, :d_out].set(weight.T.astype(dtype))
    b2 = jnp.zeros((1, d_out_p), jnp.float32)
    b2 = b2.at[0, :d_out].set(bias.astype(jnp.float32))
    return w_t, b2


@functools.partial(jax.jit, static_argnames=("d_out",))
def multilabel_logreg_forward(x, w_t_pad, b_pad, d_out):
    """sigmoid(x @ W^T + b); W stored pre-transposed/lane-padded (prepare_params)."""
    B, d_in = x.shape
    d_in_w, d_out_p = w_t_pad.shape
    assert d_in == d_in_w

    # Match operand dtypes (store x in bf16 upstream to make this a no-op).
    if x.dtype != w_t_pad.dtype:
        x = x.astype(w_t_pad.dtype)

    # Tile sizes.  Memory-bound kernel -> big tiles; tm always a multiple of
    # 16 (bf16 sublane packing).  K (= d_in) is small and kept whole per block.
    # TODO(synk): add a third "arbitrary" K grid axis + f32 scratch for very large D_in.
    if B >= 512:
        tm = 512
    elif B >= 128:
        tm = 128
    else:
        tm = _round_up(B, 16)
    if d_out_p % 512 == 0:
        tn = 512
    elif d_out_p % 256 == 0:
        tn = 256
    else:
        tn = _LANE

    grid_i = pl.cdiv(B, tm)
    grid_j = d_out_p // tn
    # v7x has 2 TensorCores: make sure a "parallel" axis has >= 2 blocks when
    # the problem allows it (harmless on single-TC v5e/v6e at these sizes).
    if grid_i * grid_j < 2 and B > 16:
        tm = max(16, _round_up(pl.cdiv(B, 2), 16))
        grid_i = pl.cdiv(B, tm)

    # Output is emitted at its true width (no post-call slice copy).  When
    # there is a single column block the output block spans exactly d_out
    # columns (full-dim block, masked store); otherwise column blocks are
    # lane-dense (tn) and only the final partial block (if any) is masked.
    out_bn = tn if grid_j > 1 else d_out

    out = pl.pallas_call(
        _logreg_kernel,
        out_shape=jax.ShapeDtypeStruct((B, d_out), jnp.float32),
        grid_spec=pl.GridSpec(
            # j innermost: x (the big operand) streams from HBM once; the tiny
            # weight is the re-fetched side.
            grid=(grid_i, grid_j),
            in_specs=[
                pl.BlockSpec((tm, d_in), lambda i, j: (i, 0)),    # x rows, full K
                pl.BlockSpec((d_in, tn), lambda i, j: (0, j)),    # W^T col block
                pl.BlockSpec((1, tn), lambda i, j: (0, j)),       # bias col block
            ],
            out_specs=pl.BlockSpec((tm, out_bn), lambda i, j: (i, j)),
        ),
        compiler_params=pltpu.CompilerParams(
            dimension_semantics=("parallel", "parallel"),
        ),
    )(x, w_t_pad, b_pad)

    return out


if __name__ == "__main__":
    # Shapes implied by the module: input_dim = 25 (cols 2:27),
    # output_dim = 13 (cols 27:40); batch 128 of synthetic spectra features.
    batch = 128
    input_dim = 25
    output_dim = 13

    key = jax.random.PRNGKey(0)
    kx, kw, kb = jax.random.split(key, 3)

    x = jax.random.normal(kx, (batch, input_dim), dtype=jnp.float32)
    # Deterministic nn.Linear-style init (uniform in +/- 1/sqrt(fan_in)).
    bound = 1.0 / (input_dim ** 0.5)
    weight = jax.random.uniform(kw, (output_dim, input_dim),
                                minval=-bound, maxval=bound, dtype=jnp.float32)
    bias = jax.random.uniform(kb, (output_dim,),
                              minval=-bound, maxval=bound, dtype=jnp.float32)

    # Pure-JAX reference.
    ref = jax.nn.sigmoid(x @ weight.T + bias)

    # f32 operand path (tolerance reflects approx-reciprocal in the epilogue).
    w32, b32 = prepare_params(weight, bias, dtype=jnp.float32)
    out32 = jax.block_until_ready(
        multilabel_logreg_forward(x, w32, b32, output_dim))
    assert out32.shape == (batch, output_dim)
    assert jnp.allclose(out32, ref, atol=1e-2, rtol=1e-2)

    # bf16 operand path (halved HBM traffic; f32 accumulate + epilogue).
    wbf, bbf = prepare_params(weight, bias, dtype=jnp.bfloat16)
    outbf = jax.block_until_ready(
        multilabel_logreg_forward(x, wbf, bbf, output_dim))
    assert outbf.shape == (batch, output_dim)
    assert jnp.allclose(outbf, ref, atol=2.5e-2, rtol=2.5e-2)

    print("KERNEL_OK")
</pallas_src>

<mosaic_0001>
module attributes {stable_mosaic.version = 11 : i64} {
  func.func @_logreg_kernel(%arg0: i32, %arg1: i32, %arg2: memref<64x25xf32, #tpu.memory_space<vmem>>, %arg3: memref<25x128xf32, #tpu.memory_space<vmem>>, %arg4: memref<1x128xf32, #tpu.memory_space<vmem>>, %arg5: memref<64x13xf32, #tpu.memory_space<vmem>>) attributes {dimension_semantics = [#tpu.dimension_semantics<parallel>, #tpu.dimension_semantics<parallel>], iteration_bounds = array<i64: 2, 1>, scalar_prefetch = 0 : i64, scratch_operands = 0 : i64, tpu.core_type = #tpu.core_type<tc>, window_params = [{transform_indices = @transform_0, window_bounds = array<i64: 64, 25>}, {transform_indices = @transform_1, window_bounds = array<i64: 25, 128>}, {transform_indices = @transform_2, window_bounds = array<i64: 1, 128>}, {transform_indices = @transform_3, window_bounds = array<i64: 64, 13>}]} {
    %c0 = arith.constant 0 : index
    %c0_0 = arith.constant 0 : index
    %0 = vector.load %arg2[%c0, %c0_0] : memref<64x25xf32, #tpu.memory_space<vmem>>, vector<64x25xf32>
    %c0_1 = arith.constant 0 : index
    %c0_2 = arith.constant 0 : index
    %1 = vector.load %arg3[%c0_1, %c0_2] : memref<25x128xf32, #tpu.memory_space<vmem>>, vector<25x128xf32>
    %cst = arith.constant dense<0.000000e+00> : vector<64x128xf32>
    %2 = tpu.matmul %0, %1, %cst {dimension_numbers = #tpu.dot_dimension_numbers<[1], [0], [0], [1], [0, 0, 1, 1], [], []>} : vector<64x25xf32>, vector<25x128xf32>, vector<64x128xf32> -> vector<64x128xf32>
    %c0_3 = arith.constant 0 : index
    %c0_4 = arith.constant 0 : index
    %3 = vector.load %arg4[%c0_3, %c0_4] : memref<1x128xf32, #tpu.memory_space<vmem>>, vector<1x128xf32>
    %4 = vector.broadcast %3 : vector<1x128xf32> to vector<64x128xf32>
    %5 = arith.addf %2, %4 : vector<64x128xf32>
    %cst_5 = arith.constant 0.000000e+00 : f32
    %6 = vector.broadcast %cst_5 : f32 to vector<64x128xf32>
    %7 = arith.subf %6, %5 : vector<64x128xf32>
    %8 = math.exp %7 : vector<64x128xf32>
    %cst_6 = arith.constant 1.000000e+00 : f32
    %9 = vector.broadcast %cst_6 : f32 to vector<64x128xf32>
    %10 = arith.addf %9, %8 : vector<64x128xf32>
    %11 = tpu.reciprocal %10 {approx = true} : vector<64x128xf32> -> vector<64x128xf32>
    %12 = vector.extract_strided_slice %11 {offsets = [0, 0], sizes = [64, 13], strides = [1, 1]} : vector<64x128xf32> to vector<64x13xf32>
    %c0_7 = arith.constant 0 : index
    %c0_8 = arith.constant 0 : index
    %13 = vector.load %arg5[%c0_7, %c0_8] : memref<64x13xf32, #tpu.memory_space<vmem>>, vector<64x13xf32>
    tpu.vector_store %arg5[%c0_7, %c0_8], %12 {strides = array<i32>} : memref<64x13xf32, #tpu.memory_space<vmem>>, vector<64x13xf32>,
    return
  }
  func.func @transform_0(%arg0: i32, %arg1: i32) -> (i32, i32) {
    %c0_i32 = arith.constant 0 : i32
    %c0_i32_0 = arith.constant 0 : i32
    return %arg0, %c0_i32 : i32, i32
  }
  func.func @transform_1(%arg0: i32, %arg1: i32) -> (i32, i32) {
    %c0_i32 = arith.constant 0 : i32
    %c0_i32_0 = arith.constant 0 : i32
    return %c0_i32, %arg1 : i32, i32
  }
  func.func @transform_2(%arg0: i32, %arg1: i32) -> (i32, i32) {
    %c0_i32 = arith.constant 0 : i32
    %c0_i32_0 = arith.constant 0 : i32
    return %c0_i32, %arg1 : i32, i32
  }
  func.func @transform_3(%arg0: i32, %arg1: i32) -> (i32, i32) {
    %c0_i32 = arith.constant 0 : i32
    return %arg0, %arg1 : i32, i32
  }
}

</mosaic_0001>

<bundles_post_ra>
// kernel: multilabel_logreg_forward.1
= control target key start
LH: loop header
LB: loop body
LE: loop exit
PB: predicated region body
PF: predicated region fallthrough
CT: control target
= control target key end

     0   :  { %s700_s12 = smov 0   ;;  %s702_s13 = smov 0   ;;  %s771_s0 = inlined_call_operand.vmem [shape: f32[128,25], index: 0, kind: input, shape index: {}]   ;;  %s772_s1 = inlined_call_operand.vmem [shape: f32[25,128], index: 1, kind: input, shape index: {}]   ;;  %s773_s2 = inlined_call_operand.vmem [shape: f32[1,128], index: 2, kind: input, shape index: {}]   ;;  %s774_s3 = inlined_call_operand.vmem [shape: f32[128,13], index: 3, kind: output, shape index: {}]  }
   0x1   :  { %s704_s14 = smov 0  }
   0x2 LB: > { %s25_s15 = sadd.s32 1, %s673_s13  ;;  %p535_p0 = scmp.ge.s32.totalorder %s677_s14, 1  ;;  %s677_s14 = sphi %s704_s14, %s13_s14   ;;  %s673_s13 = sphi %s702_s13, %s776_s13   ;;  %s669_s12 = sphi %s700_s12, %s775_s12  }
   0x3   : > { %p27_p1 = scmp.ge.s32.totalorder %s25_s15, 2  ;;  %p169_p2 = scmp.lt.s32.totalorder %s677_s14, 3 }
   0x5   : > { %s778_s15 = smov (%p27_p1, %s25_s15), 0  ;;  %p170_p3 = pnand %p535_p0, %p169_p2 }
   0x6   : > { %v233_v0 = vld [vmem:[%s772_s1] sm:$0xff] (!%p170_p3)  ;;  %v234_v1 = vld [vmem:[%s772_s1 + $0x8] sm:$0xff] (!%p170_p3)  ;;  %v235_v2 = vld [vmem:[%s772_s1 + $0x10] sm:$0xff] (!%p170_p3)  ;;  %vm269_vm0 = vcmask (!%p170_p3), 1040384   ;;  %s536_s22 = sshll.u32 (!%p170_p3), %s669_s12, 3  ;;  %vm679_vm1 = vmmov (!%p170_p3), 1  }
   0x7   : > { %173 = sbr.rel (%p170_p3) target bundleno = 269 (0x10d), region = 32  ;;  %v584_v3 = vpack.c.bf16 (!%p170_p3), %v234_v1, %v233_v0  ;;  %v236_v4 = vld [vmem:[%s772_s1 + $0x18] sm:$0x1] (!%p170_p3)  ;;  %p204_p4 = scmp.lt.s32.totalorder (!%p170_p3), %s536_s22, 15  ;;  %vm589_vm2 = vmpackc.low (!%p170_p3), %vm269_vm0, %vm679_vm1  ;;  %vm244_vm3 = vcmask (!%p170_p3), 203776   ;;  %vm418_vm4 = vcmask (!%p170_p3), 105472  }
   0x8   : > { %v588_v5 = vpack.c.bf16 (!%p170_p3), %v236_v4, %v235_v2  ;;  %v540_v14 = vld [vmem:[%s773_s2] ss:$0 sm:$0xff] (!%p170_p3) }
   0x9   : > { %585 = vmatprep.subr.bf16.mxu0 (!%p170_p3), %v584_v3  ;;  %594 = vmatprep.subr.bf16.mxu1 (!%p170_p3), %v584_v3 }
   0xa   : > { %587 = vmatpush3.bf16.msra.mxu0 (!%p170_p3), %v584_v3  ;;  %596 = vmatpush3.bf16.msra.mxu1 (!%p170_p3), %v584_v3 }
   0xb   : > { %590 = vmatprep.subr.msk.bf16.mxu0 (!%p170_p3), %vm589_vm2, %v588_v5  ;;  %595 = vmatprep.subr.msk.bf16.mxu1 (!%p170_p3), %vm589_vm2, %v588_v5 }
   0xe   : > { %s780_s22 = smov (!%p204_p4, %s536_s22), 15  ;;  %593 = vmatpush3.bf16.msk.msra.mxu0 %vm589_vm2, %v588_v5  ;;  %597 = vmatpush3.bf16.msk.msra.mxu1 %vm589_vm2, %v588_v5 }
   0xf   : > { %s537_s25 = sshll.u32 %s780_s22, 3 }
  0x10   : > { %s207_s28 = scalar_lea.vmem %s771_s0, %s537_s25  ;;  %s223_s6 = scalar_lea.vmem %s774_s3, %s537_s25 }
  0x11   : > { %v225_v6 = vld [vmem:[%s207_s28] sm:$0xff]  ;;  %v226_v8 = vld [vmem:[%s207_s28 + $0x8] sm:$0xff]  ;;  %v227_v10 = vld [vmem:[%s207_s28 + $0x10] sm:$0xff] }
  0x12   : > { %v229_v7 = vld [vmem:[%s207_s28 + $0x20] sm:$0xff]  ;;  %v230_v9 = vld [vmem:[%s207_s28 + $0x28] sm:$0xff]  ;;  %572 = vmatprep.mubr.msk.f32.mxu0 %vm244_vm3, %v225_v6  ;;  %v231_v11 = vld [vmem:[%s207_s28 + $0x30] sm:$0xff] }
  0x13   : > { %578 = vmatprep.mubr.msk.f32.mxu1 %vm244_vm3, %v229_v7  ;;  %573 = vmatmul.mubr.msk.f32.vlgmr.msra.gmra.mrb[0].mxu0 %vm244_vm3, %v226_v8  ;;  %v228_v12 = vld [vmem:[%s207_s28 + $0x18] sm:$0xff] }
  0x14   : > { %579 = vmatmul.mubr.msk.f32.vlgmr.msra.gmra.mrb[0].mxu1 %vm244_vm3, %v230_v9  ;;  %575 = vmatprep.mubr.msk.f32.mxu0 %vm244_vm3, %v227_v10  ;;  %v232_v13 = vld [vmem:[%s207_s28 + $0x38] sm:$0xff] }
  0x15   : > { %581 = vmatprep.mubr.msk.f32.mxu1 %vm244_vm3, %v231_v11 }
  0x17   : > { %576 = vmatmul.mubr.msk.f32.gmra.mrb[2].mxu0 %vm244_vm3, %v228_v12 }
  0x18   : > { %582 = vmatmul.mubr.msk.f32.gmra.mrb[2].mxu1 %vm244_vm3, %v232_v13 }
  0xe6   : > { %v574_v15 = vpop.f32.mrb[0].mxu0 }
  0xe7   : > { %v580_v16 = vpop.f32.mrb[0].mxu1  ;;  %v345_v17 = vadd.f32 %v574_v15, %v540_v14  ;;  %v339_v19 = vpop.f32.mrb[1].mxu0 }
  0xe8   : > { %v365_v18 = vadd.f32 %v580_v16, %v540_v14  ;;  %v359_v20 = vpop.f32.mrb[1].mxu1  ;;  %v340_v21 = vadd.f32 %v540_v14, %v339_v19 }
  0xe9   : > { %v360_v22 = vadd.f32 %v540_v14, %v359_v20  ;;  %v379_v23 = vsub.f32 0.0, %v345_v17 }
  0xea   : > { %v383_v24 = vsub.f32 0.0, %v365_v18  ;;  %v378_v25 = vsub.f32 0.0, %v340_v21  ;;  %v577_v27 = vpop.f32.mrb[2].mxu0 }
  0xeb   : > { %v382_v26 = vsub.f32 0.0, %v360_v22  ;;  %v583_v28 = vpop.f32.mrb[2].mxu1  ;;  %v388_v29 = vmul.f32 1.442695, %v379_v23  ;;  %v355_v31 = vadd.f32 %v577_v27, %v540_v14  ;;  %v349_v33 = vpop.f32.mrb[3].mxu0 }
  0xec   : > { %v396_v30 = vmul.f32 1.442695, %v383_v24  ;;  %v375_v32 = vadd.f32 %v583_v28, %v540_v14  ;;  %v369_v34 = vpop.f32.mrb[3].mxu1  ;;  %v386_v35 = vmul.f32 1.442695, %v378_v25  ;;  %v350_v37 = vadd.f32 %v540_v14, %v349_v33 }
  0xed   : > { %v394_v36 = vmul.f32 1.442695, %v382_v26  ;;  %v370_v38 = vadd.f32 %v540_v14, %v369_v34  ;;  %623 = vpow2.f32 %v388_v29  ;;  %v381_v39 = vsub.f32 0.0, %v355_v31 }
  0xee   : > { %v385_v40 = vsub.f32 0.0, %v375_v32  ;;  %625 = vpow2.f32 %v396_v30  ;;  %v380_v41 = vsub.f32 0.0, %v350_v37 }
  0xef   : > { %v384_v42 = vsub.f32 0.0, %v370_v38  ;;  %627 = vpow2.f32 %v386_v35  ;;  %v392_v43 = vmul.f32 1.442695, %v381_v39 }
  0xf0   : > { %v400_v44 = vmul.f32 1.442695, %v385_v40  ;;  %629 = vpow2.f32 %v394_v36  ;;  %v390_v45 = vmul.f32 1.442695, %v380_v41 }
  0xf1   : > { %v398_v46 = vmul.f32 1.442695, %v384_v42  ;;  %631 = vpow2.f32 %v392_v43 }
  0xf2   : > { %633 = vpow2.f32 %v400_v44 }
  0xf3   : > { %635 = vpow2.f32 %v390_v45 }
  0xf4   : > { %637 = vpow2.f32 %v398_v46 }
  0xf7   : > { %v624_v47 = vpop.eup %623 }
  0xf8   : > { %v626_v48 = vpop.eup %625  ;;  %v403_v49 = vadd.f32 1.0, %v624_v47 }
  0xf9   : > { %v628_v50 = vpop.eup %627  ;;  %v407_v51 = vadd.f32 1.0, %v626_v48 }
  0xfa   : > { %v630_v52 = vpop.eup %629  ;;  %639 = vrcp.f32 %v403_v49  ;;  %v402_v53 = vadd.f32 1.0, %v628_v50 }
  0xfb   : > { %v632_v54 = vpop.eup %631  ;;  %641 = vrcp.f32 %v407_v51  ;;  %v406_v55 = vadd.f32 1.0, %v630_v52 }
  0xfc   : > { %v634_v56 = vpop.eup %633  ;;  %643 = vrcp.f32 %v402_v53  ;;  %v405_v57 = vadd.f32 1.0, %v632_v54 }
  0xfd   : > { %v636_v58 = vpop.eup %635  ;;  %645 = vrcp.f32 %v406_v55  ;;  %v409_v59 = vadd.f32 1.0, %v634_v56 }
  0xfe   : > { %v638_v60 = vpop.eup %637  ;;  %647 = vrcp.f32 %v405_v57  ;;  %v404_v61 = vadd.f32 1.0, %v636_v58 }
  0xff   : > { %649 = vrcp.f32 %v409_v59  ;;  %v408_v62 = vadd.f32 1.0, %v638_v60 }
 0x100   : > { %651 = vrcp.f32 %v404_v61 }
 0x101   : > { %653 = vrcp.f32 %v408_v62 }
 0x104   : > { %v640_v63 = vpop.eup %639 }
 0x105   : > { %v642_v0 = vpop.eup %641  ;;  %420 = vst.msk [vmem:[%s223_s6 + $0x8] sm:$0xff] %vm418_vm4, %v640_v63 }
 0x106   : > { %v644_v1 = vpop.eup %643  ;;  %424 = vst.msk [vmem:[%s223_s6 + $0x28] sm:$0xff] %vm418_vm4, %v642_v0 }
 0x107   : > { %v646_v2 = vpop.eup %645  ;;  %419 = vst.msk [vmem:[%s223_s6] sm:$0xff] %vm418_vm4, %v644_v1 }
 0x108   : > { %v648_v3 = vpop.eup %647  ;;  %423 = vst.msk [vmem:[%s223_s6 + $0x20] sm:$0xff] %vm418_vm4, %v646_v2 }
 0x109   : > { %v650_v4 = vpop.eup %649  ;;  %422 = vst.msk [vmem:[%s223_s6 + $0x18] sm:$0xff] %vm418_vm4, %v648_v3 }
 0x10a   : > { %v652_v5 = vpop.eup %651  ;;  %426 = vst.msk [vmem:[%s223_s6 + $0x38] sm:$0xff] %vm418_vm4, %v650_v4 }
 0x10b   : > { %v654_v6 = vpop.eup %653  ;;  %421 = vst.msk [vmem:[%s223_s6 + $0x10] sm:$0xff] %vm418_vm4, %v652_v5 }
 0x10c   : > { %425 = vst.msk [vmem:[%s223_s6 + $0x30] sm:$0xff] %vm418_vm4, %v654_v6 }
 0x10d PF: > { %s13_s14 = sadd.s32 1, %s677_s14   ;;  %s775_s12 = smov %s673_s13 }
 0x10e   : > { %p10_p5 = scmp.ge.s32.totalorder %s13_s14, 4   ;;  %s776_s13 = smov %s778_s15 }
 0x110   :  { %12 = sbr.rel (!%p10_p5) target bundleno = 2 (0x2), region = 68 }

</bundles_post_ra>
